<compile_context>
chip_gen: v7x
topology: tpu7x:2x2x1
jax: 0.10.0
libtpu: 0.0.40
codegen_flags: <defaults>
</compile_context>

<pallas_src>
import functools

import jax
import jax.numpy as jnp
from jax.experimental import pallas as pl
from jax.experimental.pallas import tpu as pltpu


def vae_kernel(x_ref, eps_ref,
               w1_ref, b1_ref,
               w2_ref, b2_ref,
               w3_ref, b3_ref,
               w4_ref, b4_ref,
               recon_ref, mu_ref, logvar_ref):
    """One batch-tile of the full VAE forward.

    encoder:  h   = relu(x @ W1 + b1)
              enc = h @ W2 + b2
              mu, log_var = enc[:, :L], enc[:, L:]          # == torch.chunk(enc, 2, -1)
    reparam:  z   = mu + eps * exp(0.5 * log_var)
    decoder:  h2  = relu(z @ W3 + b3)
              y   = h2 @ W4 + b4
    """
    f32 = jnp.float32
    mxu_dt = w1_ref.dtype           # bf16 stays bf16 into the MXU; f32 is a no-op cast
    L = eps_ref.shape[-1]

    x = x_ref[...].astype(mxu_dt)

    # --- encoder ---
    h = jnp.dot(x, w1_ref[...], preferred_element_type=f32) + b1_ref[...]
    h = jnp.maximum(h, 0.0).astype(mxu_dt)                   # ReLU

    # Single fused latent-head matmul (N = 2L); split lanes in-kernel (single vreg).
    enc = jnp.dot(h, w2_ref[...], preferred_element_type=f32) + b2_ref[...]
    mu = enc[:, :L]
    log_var = enc[:, L:]

    # --- reparameterize (f32 elementwise: exp goes to the EUP) ---
    std = jnp.exp(0.5 * log_var)
    z = (mu + eps_ref[...].astype(f32) * std).astype(mxu_dt)

    # --- decoder ---
    h2 = jnp.dot(z, w3_ref[...], preferred_element_type=f32) + b3_ref[...]
    h2 = jnp.maximum(h2, 0.0).astype(mxu_dt)                  # ReLU
    recon = jnp.dot(h2, w4_ref[...], preferred_element_type=f32) + b4_ref[...]

    recon_ref[...] = recon.astype(recon_ref.dtype)
    mu_ref[...] = mu.astype(mu_ref.dtype)
    logvar_ref[...] = log_var.astype(logvar_ref.dtype)


def _pick_batch_tile(B, max_tile):
    """Largest tile <= max_tile that divides B (>= 8 when possible), else 0 (=> pad)."""
    tb = min(max_tile, B)
    while tb >= 8:
        if B % tb == 0:
            return tb
        tb -= 8 if tb % 8 == 0 else tb % 8
    return 0


@functools.partial(jax.jit, static_argnames=("batch_tile",))
def vae_forward(x, eps, params, *, batch_tile=128):
    B, D = x.shape
    L = eps.shape[-1]
    I = params["w1"].shape[-1]
    mxu_dt = params["w1"].dtype
    out_dt = x.dtype

    # Cast inputs to the weight dtype once in the wrapper (bf16 path needs bf16 x too).
    x = x.astype(mxu_dt)
    eps = eps.astype(mxu_dt)

    # Batch tile that divides B -> no pad / un-pad HBM passes in the common case.
    tb = _pick_batch_tile(B, batch_tile)
    Bp = B
    if tb == 0:                      # fallback for awkward batch sizes only
        tb = min(batch_tile, max(8, B))
        Bp = ((B + tb - 1) // tb) * tb
        x = jnp.pad(x, ((0, Bp - B), (0, 0)))
        eps = jnp.pad(eps, ((0, Bp - B), (0, 0)))

    grid = (Bp // tb,)

    # Biases resident as f32 (tiny) -> no per-step casts inside the kernel.
    b1 = params["b1"].astype(jnp.float32)
    b2 = params["b2"].astype(jnp.float32)
    b3 = params["b3"].astype(jnp.float32)
    b4 = params["b4"].astype(jnp.float32)

    # Weights/biases: whole-array, resident in VMEM for the entire call (single-buffered,
    # no per-step re-DMA). Only x / eps / outputs are tiled and pipelined.
    resident = pl.BlockSpec(memory_space=pltpu.MemorySpace.VMEM)

    in_specs = [
        pl.BlockSpec((tb, D), lambda i: (i, 0)),          # x
        pl.BlockSpec((tb, L), lambda i: (i, 0)),          # eps
        resident, resident,                               # W1, b1
        resident, resident,                               # W2, b2
        resident, resident,                               # W3, b3
        resident, resident,                               # W4, b4
    ]
    out_specs = [
        pl.BlockSpec((tb, D), lambda i: (i, 0)),          # reconstruction
        pl.BlockSpec((tb, L), lambda i: (i, 0)),          # mu
        pl.BlockSpec((tb, L), lambda i: (i, 0)),          # log_var
    ]
    out_shape = [
        jax.ShapeDtypeStruct((Bp, D), out_dt),
        jax.ShapeDtypeStruct((Bp, L), out_dt),
        jax.ShapeDtypeStruct((Bp, L), out_dt),
    ]

    itemsize = jnp.dtype(mxu_dt).itemsize
    weight_bytes = (D * I + I * 2 * L + L * I + I * D) * itemsize + (I + 2 * L + I + D) * 4
    io_bytes = Bp * (D + L) * itemsize + Bp * (D + 2 * L) * jnp.dtype(out_dt).itemsize
    cost = pl.CostEstimate(
        flops=2 * Bp * (D * I + I * 2 * L + L * I + I * D),
        transcendentals=Bp * L,
        bytes_accessed=weight_bytes + io_bytes,
    )

    recon, mu, log_var = pl.pallas_call(
        vae_kernel,
        grid=grid,
        in_specs=in_specs,
        out_specs=out_specs,
        out_shape=out_shape,
        cost_estimate=cost,
        compiler_params=pltpu.CompilerParams(
            dimension_semantics=("parallel",)),
    )(x, eps,
      params["w1"], b1,
      params["w2"], b2,
      params["w3"], b3,
      params["w4"], b4)

    if Bp != B:
        recon, mu, log_var = recon[:B], mu[:B], log_var[:B]
    return recon, mu, log_var


def init_params(key, original_dim, intermediate_dim, latent_dim, dtype=jnp.float32):
    """Deterministic synthetic parameters (shapes match the nn.Module)."""
    ks = jax.random.split(key, 8)
    s = 0.05
    return {
        # encoder
        "w1": (s * jax.random.normal(ks[0], (original_dim, intermediate_dim))).astype(dtype),
        "b1": (s * jax.random.normal(ks[1], (1, intermediate_dim))).astype(dtype),
        "w2": (s * jax.random.normal(ks[2], (intermediate_dim, 2 * latent_dim))).astype(dtype),
        "b2": (s * jax.random.normal(ks[3], (1, 2 * latent_dim))).astype(dtype),
        # decoder
        "w3": (s * jax.random.normal(ks[4], (latent_dim, intermediate_dim))).astype(dtype),
        "b3": (s * jax.random.normal(ks[5], (1, intermediate_dim))).astype(dtype),
        "w4": (s * jax.random.normal(ks[6], (intermediate_dim, original_dim))).astype(dtype),
        "b4": (s * jax.random.normal(ks[7], (1, original_dim))).astype(dtype),
    }


def vae_reference(x, eps, p):
    """Pure-JAX reference of the PyTorch forward()."""
    h = jax.nn.relu(x @ p["w1"] + p["b1"])
    enc = h @ p["w2"] + p["b2"]
    latent = eps.shape[-1]
    mu, log_var = enc[:, :latent], enc[:, latent:]
    z = mu + eps * jnp.exp(0.5 * log_var)
    h2 = jax.nn.relu(z @ p["w3"] + p["b3"])
    return h2 @ p["w4"] + p["b4"], mu, log_var


if __name__ == "__main__":
    # Small shapes consistent with the module (flattened-vector VAE).
    batch = 256
    original_dim = 64
    intermediate_dim = 32
    latent_dim = 2

    key = jax.random.PRNGKey(0)
    k_x, k_eps, k_p = jax.random.split(key, 3)

    x = jax.random.normal(k_x, (batch, original_dim), jnp.float32)
    # eps plays the role of torch.randn_like(std) in reparameterize().
    eps = jax.random.normal(k_eps, (batch, latent_dim), jnp.float32)
    params = init_params(k_p, original_dim, intermediate_dim, latent_dim)

    # tb=128 divides batch=256 -> grid=(2,), no pad / un-pad, both v7x cores busy.
    recon, mu, log_var = vae_forward(x, eps, params, batch_tile=128)
    jax.block_until_ready((recon, mu, log_var))

    r_ref, mu_ref, lv_ref = vae_reference(x, eps, params)
    assert jnp.allclose(recon, r_ref, atol=1e-5, rtol=1e-5)
    assert jnp.allclose(mu, mu_ref, atol=1e-5, rtol=1e-5)
    assert jnp.allclose(log_var, lv_ref, atol=1e-5, rtol=1e-5)

    print("KERNEL_OK")
</pallas_src>

<mosaic_0001>
module attributes {stable_mosaic.version = 11 : i64} {
  func.func @vae_kernel(%arg0: i32, %arg1: memref<128x64xf32, #tpu.memory_space<vmem>>, %arg2: memref<128x2xf32, #tpu.memory_space<vmem>>, %arg3: memref<64x32xf32, #tpu.memory_space<vmem>>, %arg4: memref<1x32xf32, #tpu.memory_space<vmem>>, %arg5: memref<32x4xf32, #tpu.memory_space<vmem>>, %arg6: memref<1x4xf32, #tpu.memory_space<vmem>>, %arg7: memref<2x32xf32, #tpu.memory_space<vmem>>, %arg8: memref<1x32xf32, #tpu.memory_space<vmem>>, %arg9: memref<32x64xf32, #tpu.memory_space<vmem>>, %arg10: memref<1x64xf32, #tpu.memory_space<vmem>>, %arg11: memref<128x64xf32, #tpu.memory_space<vmem>>, %arg12: memref<128x2xf32, #tpu.memory_space<vmem>>, %arg13: memref<128x2xf32, #tpu.memory_space<vmem>>) attributes {dimension_semantics = [#tpu.dimension_semantics<parallel>], iteration_bounds = array<i64: 2>, scalar_prefetch = 0 : i64, scratch_operands = 0 : i64, tpu.core_type = #tpu.core_type<tc>, window_params = [{transform_indices = @transform_0, window_bounds = array<i64: 128, 64>}, {transform_indices = @transform_1, window_bounds = array<i64: 128, 2>}, {pipeline_mode = #tpu.pipeline_mode<synchronous>, transform_indices = @transform_2, window_bounds = array<i64: 64, 32>}, {pipeline_mode = #tpu.pipeline_mode<synchronous>, transform_indices = @transform_3, window_bounds = array<i64: 1, 32>}, {pipeline_mode = #tpu.pipeline_mode<synchronous>, transform_indices = @transform_4, window_bounds = array<i64: 32, 4>}, {pipeline_mode = #tpu.pipeline_mode<synchronous>, transform_indices = @transform_5, window_bounds = array<i64: 1, 4>}, {pipeline_mode = #tpu.pipeline_mode<synchronous>, transform_indices = @transform_6, window_bounds = array<i64: 2, 32>}, {pipeline_mode = #tpu.pipeline_mode<synchronous>, transform_indices = @transform_7, window_bounds = array<i64: 1, 32>}, {pipeline_mode = #tpu.pipeline_mode<synchronous>, transform_indices = @transform_8, window_bounds = array<i64: 32, 64>}, {pipeline_mode = #tpu.pipeline_mode<synchronous>, transform_indices = @transform_9, window_bounds = array<i64: 1, 64>}, {transform_indices = @transform_10, window_bounds = array<i64: 128, 64>}, {transform_indices = @transform_11, window_bounds = array<i64: 128, 2>}, {transform_indices = @transform_12, window_bounds = array<i64: 128, 2>}]} {
    %c0 = arith.constant 0 : index
    %c0_0 = arith.constant 0 : index
    %0 = vector.load %arg1[%c0, %c0_0] : memref<128x64xf32, #tpu.memory_space<vmem>>, vector<128x64xf32>
    %c0_1 = arith.constant 0 : index
    %c0_2 = arith.constant 0 : index
    %1 = vector.load %arg3[%c0_1, %c0_2] : memref<64x32xf32, #tpu.memory_space<vmem>>, vector<64x32xf32>
    %cst = arith.constant dense<0.000000e+00> : vector<128x32xf32>
    %2 = tpu.matmul %0, %1, %cst {dimension_numbers = #tpu.dot_dimension_numbers<[1], [0], [0], [1], [0, 0, 1, 1], [], []>} : vector<128x64xf32>, vector<64x32xf32>, vector<128x32xf32> -> vector<128x32xf32>
    %c0_3 = arith.constant 0 : index
    %c0_4 = arith.constant 0 : index
    %3 = vector.load %arg4[%c0_3, %c0_4] : memref<1x32xf32, #tpu.memory_space<vmem>>, vector<1x32xf32>
    %4 = vector.broadcast %3 : vector<1x32xf32> to vector<128x32xf32>
    %5 = arith.addf %2, %4 : vector<128x32xf32>
    %cst_5 = arith.constant 0.000000e+00 : f32
    %6 = vector.broadcast %cst_5 : f32 to vector<128x32xf32>
    %7 = arith.maximumf %5, %6 : vector<128x32xf32>
    %c0_6 = arith.constant 0 : index
    %c0_7 = arith.constant 0 : index
    %8 = vector.load %arg5[%c0_6, %c0_7] : memref<32x4xf32, #tpu.memory_space<vmem>>, vector<32x4xf32>
    %cst_8 = arith.constant dense<0.000000e+00> : vector<128x4xf32>
    %9 = tpu.matmul %7, %8, %cst_8 {dimension_numbers = #tpu.dot_dimension_numbers<[1], [0], [0], [1], [0, 0, 1, 1], [], []>} : vector<128x32xf32>, vector<32x4xf32>, vector<128x4xf32> -> vector<128x4xf32>
    %c0_9 = arith.constant 0 : index
    %c0_10 = arith.constant 0 : index
    %10 = vector.load %arg6[%c0_9, %c0_10] : memref<1x4xf32, #tpu.memory_space<vmem>>, vector<1x4xf32>
    %11 = vector.broadcast %10 : vector<1x4xf32> to vector<128x4xf32>
    %12 = arith.addf %9, %11 : vector<128x4xf32>
    %13 = vector.extract_strided_slice %12 {offsets = [0, 0], sizes = [128, 2], strides = [1, 1]} : vector<128x4xf32> to vector<128x2xf32>
    %14 = vector.extract_strided_slice %12 {offsets = [0, 2], sizes = [128, 2], strides = [1, 1]} : vector<128x4xf32> to vector<128x2xf32>
    %cst_11 = arith.constant 5.000000e-01 : f32
    %15 = vector.broadcast %cst_11 : f32 to vector<128x2xf32>
    %16 = arith.mulf %15, %14 : vector<128x2xf32>
    %17 = math.exp %16 : vector<128x2xf32>
    %c0_12 = arith.constant 0 : index
    %c0_13 = arith.constant 0 : index
    %18 = vector.load %arg2[%c0_12, %c0_13] : memref<128x2xf32, #tpu.memory_space<vmem>>, vector<128x2xf32>
    %19 = arith.mulf %18, %17 : vector<128x2xf32>
    %20 = arith.addf %13, %19 : vector<128x2xf32>
    %c0_14 = arith.constant 0 : index
    %c0_15 = arith.constant 0 : index
    %21 = vector.load %arg7[%c0_14, %c0_15] : memref<2x32xf32, #tpu.memory_space<vmem>>, vector<2x32xf32>
    %cst_16 = arith.constant dense<0.000000e+00> : vector<128x32xf32>
    %22 = tpu.matmul %20, %21, %cst_16 {dimension_numbers = #tpu.dot_dimension_numbers<[1], [0], [0], [1], [0, 0, 1, 1], [], []>} : vector<128x2xf32>, vector<2x32xf32>, vector<128x32xf32> -> vector<128x32xf32>
    %c0_17 = arith.constant 0 : index
    %c0_18 = arith.constant 0 : index
    %23 = vector.load %arg8[%c0_17, %c0_18] : memref<1x32xf32, #tpu.memory_space<vmem>>, vector<1x32xf32>
    %24 = vector.broadcast %23 : vector<1x32xf32> to vector<128x32xf32>
    %25 = arith.addf %22, %24 : vector<128x32xf32>
    %cst_19 = arith.constant 0.000000e+00 : f32
    %26 = vector.broadcast %cst_19 : f32 to vector<128x32xf32>
    %27 = arith.maximumf %25, %26 : vector<128x32xf32>
    %c0_20 = arith.constant 0 : index
    %c0_21 = arith.constant 0 : index
    %28 = vector.load %arg9[%c0_20, %c0_21] : memref<32x64xf32, #tpu.memory_space<vmem>>, vector<32x64xf32>
    %cst_22 = arith.constant dense<0.000000e+00> : vector<128x64xf32>
    %29 = tpu.matmul %27, %28, %cst_22 {dimension_numbers = #tpu.dot_dimension_numbers<[1], [0], [0], [1], [0, 0, 1, 1], [], []>} : vector<128x32xf32>, vector<32x64xf32>, vector<128x64xf32> -> vector<128x64xf32>
    %c0_23 = arith.constant 0 : index
    %c0_24 = arith.constant 0 : index
    %30 = vector.load %arg10[%c0_23, %c0_24] : memref<1x64xf32, #tpu.memory_space<vmem>>, vector<1x64xf32>
    %31 = vector.broadcast %30 : vector<1x64xf32> to vector<128x64xf32>
    %32 = arith.addf %29, %31 : vector<128x64xf32>
    %c0_25 = arith.constant 0 : index
    %c0_26 = arith.constant 0 : index
    %33 = vector.load %arg11[%c0_25, %c0_26] : memref<128x64xf32, #tpu.memory_space<vmem>>, vector<128x64xf32>
    tpu.vector_store %arg11[%c0_25, %c0_26], %32 {strides = array<i32>} : memref<128x64xf32, #tpu.memory_space<vmem>>, vector<128x64xf32>,
    %c0_27 = arith.constant 0 : index
    %c0_28 = arith.constant 0 : index
    %34 = vector.load %arg12[%c0_27, %c0_28] : memref<128x2xf32, #tpu.memory_space<vmem>>, vector<128x2xf32>
    tpu.vector_store %arg12[%c0_27, %c0_28], %13 {strides = array<i32>} : memref<128x2xf32, #tpu.memory_space<vmem>>, vector<128x2xf32>,
    %c0_29 = arith.constant 0 : index
    %c0_30 = arith.constant 0 : index
    %35 = vector.load %arg13[%c0_29, %c0_30] : memref<128x2xf32, #tpu.memory_space<vmem>>, vector<128x2xf32>
    tpu.vector_store %arg13[%c0_29, %c0_30], %14 {strides = array<i32>} : memref<128x2xf32, #tpu.memory_space<vmem>>, vector<128x2xf32>,
    return
  }
  func.func @transform_0(%arg0: i32) -> (i32, i32) {
    %c0_i32 = arith.constant 0 : i32
    %c0_i32_0 = arith.constant 0 : i32
    return %arg0, %c0_i32 : i32, i32
  }
  func.func @transform_1(%arg0: i32) -> (i32, i32) {
    %c0_i32 = arith.constant 0 : i32
    %c0_i32_0 = arith.constant 0 : i32
    return %arg0, %c0_i32 : i32, i32
  }
  func.func @transform_2(%arg0: i32) -> (i32, i32) {
    %c0_i32 = arith.constant 0 : i32
    %c0_i32_0 = arith.constant 0 : i32
    %c0_i32_1 = arith.constant 0 : i32
    return %c0_i32, %c0_i32_0 : i32, i32
  }
  func.func @transform_3(%arg0: i32) -> (i32, i32) {
    %c0_i32 = arith.constant 0 : i32
    %c0_i32_0 = arith.constant 0 : i32
    %c0_i32_1 = arith.constant 0 : i32
    return %c0_i32, %c0_i32_0 : i32, i32
  }
  func.func @transform_4(%arg0: i32) -> (i32, i32) {
    %c0_i32 = arith.constant 0 : i32
    %c0_i32_0 = arith.constant 0 : i32
    %c0_i32_1 = arith.constant 0 : i32
    return %c0_i32, %c0_i32_0 : i32, i32
  }
  func.func @transform_5(%arg0: i32) -> (i32, i32) {
    %c0_i32 = arith.constant 0 : i32
    %c0_i32_0 = arith.constant 0 : i32
    %c0_i32_1 = arith.constant 0 : i32
    return %c0_i32, %c0_i32_0 : i32, i32
  }
  func.func @transform_6(%arg0: i32) -> (i32, i32) {
    %c0_i32 = arith.constant 0 : i32
    %c0_i32_0 = arith.constant 0 : i32
    %c0_i32_1 = arith.constant 0 : i32
    return %c0_i32, %c0_i32_0 : i32, i32
  }
  func.func @transform_7(%arg0: i32) -> (i32, i32) {
    %c0_i32 = arith.constant 0 : i32
    %c0_i32_0 = arith.constant 0 : i32
    %c0_i32_1 = arith.constant 0 : i32
    return %c0_i32, %c0_i32_0 : i32, i32
  }
  func.func @transform_8(%arg0: i32) -> (i32, i32) {
    %c0_i32 = arith.constant 0 : i32
    %c0_i32_0 = arith.constant 0 : i32
    %c0_i32_1 = arith.constant 0 : i32
    return %c0_i32, %c0_i32_0 : i32, i32
  }
  func.func @transform_9(%arg0: i32) -> (i32, i32) {
    %c0_i32 = arith.constant 0 : i32
    %c0_i32_0 = arith.constant 0 : i32
    %c0_i32_1 = arith.constant 0 : i32
    return %c0_i32, %c0_i32_0 : i32, i32
  }
  func.func @transform_10(%arg0: i32) -> (i32, i32) {
    %c0_i32 = arith.constant 0 : i32
    %c0_i32_0 = arith.constant 0 : i32
    return %arg0, %c0_i32 : i32, i32
  }
  func.func @transform_11(%arg0: i32) -> (i32, i32) {
    %c0_i32 = arith.constant 0 : i32
    %c0_i32_0 = arith.constant 0 : i32
    return %arg0, %c0_i32 : i32, i32
  }
  func.func @transform_12(%arg0: i32) -> (i32, i32) {
    %c0_i32 = arith.constant 0 : i32
    %c0_i32_0 = arith.constant 0 : i32
    return %arg0, %c0_i32 : i32, i32
  }
}

</mosaic_0001>

<bundles_post_ra>
// kernel: vae_forward.1
= control target key start
LH: loop header
LB: loop body
LE: loop exit
PB: predicated region body
PF: predicated region fallthrough
CT: control target
= control target key end

     0   :  { %s2194_s21 = smov 0   ;;  %s2638_s0 = inlined_call_operand.vmem [shape: f32[256,64], index: 0, kind: input, shape index: {}]   ;;  %s2639_s1 = inlined_call_operand.vmem [shape: f32[256,2], index: 1, kind: input, shape index: {}]   ;;  %s2640_s2 = inlined_call_operand.vmem [shape: f32[64,32], index: 2, kind: input, shape index: {}]   ;;  %s2641_s3 = inlined_call_operand.vmem [shape: f32[1,32], index: 3, kind: input, shape index: {}]   ;;  %s2642_s4 = inlined_call_operand.vmem [shape: f32[32,4], index: 4, kind: input, shape index: {}]   ;;  %s2643_s5 = inlined_call_operand.vmem [shape: f32[1,4], index: 5, kind: input, shape index: {}]   ;;  %s2644_s6 = inlined_call_operand.vmem [shape: f32[2,32], index: 6, kind: input, shape index: {}]   ;;  %s2645_s7 = inlined_call_operand.vmem [shape: f32[1,32], index: 7, kind: input, shape index: {}]   ;;  %s2646_s8 = inlined_call_operand.vmem [shape: f32[32,64], index: 8, kind: input, shape index: {}]   ;;  %s2647_s9 = inlined_call_operand.vmem [shape: f32[1,64], index: 9, kind: input, shape index: {}]   ;;  %s2648_s10 = inlined_call_operand.vmem [shape: f32[256,64], index: 10, kind: output, shape index: {0}]   ;;  %s2649_s11 = inlined_call_operand.vmem [shape: f32[256,2], index: 11, kind: output, shape index: {1}]   ;;  %s2650_s12 = inlined_call_operand.vmem [shape: f32[256,2], index: 12, kind: output, shape index: {2}]  }
   0x1 LB: > { %s1746_s22 = sadd.s32 4294967295, %s2126_s21   ;;  %p1750_p0 = scmp.ge.s32.totalorder %s2126_s21, 1  ;;  %s2126_s21 = sphi %s2194_s21, %s23_s21  }
   0x2   : > { %p379_p1 = scmp.lt.s32.totalorder %s2126_s21, 3 }
   0x4   : > { %p380_p2 = pnand %p1750_p0, %p379_p1 }
   0x5   : > { %v482_v0 = vld [vmem:[%s2640_s2] sm:$0xff] (!%p380_p2)  ;;  %v483_v1 = vld [vmem:[%s2640_s2 + $0x8] sm:$0xff] (!%p380_p2)  ;;  %v484_v2 = vld [vmem:[%s2640_s2 + $0x10] sm:$0xff] (!%p380_p2)  ;;  %s1751_s29 = sshll.u32 (!%p380_p2), %s1746_s22, 4  ;;  %vm497_vm0 = vcmask (!%p380_p2), 523264   ;;  %vm718_vm1 = vcmask (!%p380_p2), 261120  }
   0x6   : > { %383 = sbr.rel (%p380_p2) target bundleno = 1057 (0x421), region = 60  ;;  %v2043_v3 = vpack.c.bf16 (!%p380_p2), %v483_v1, %v482_v0  ;;  %v485_v4 = vld [vmem:[%s2640_s2 + $0x18] sm:$0xff] (!%p380_p2)  ;;  %p437_p3 = scmp.lt.s32.totalorder (!%p380_p2), %s1751_s29, 31  ;;  %v486_v6 = vld [vmem:[%s2640_s2 + $0x20] sm:$0xff] (!%p380_p2)  ;;  %v487_v7 = vld [vmem:[%s2640_s2 + $0x28] sm:$0xff] (!%p380_p2)  ;;  %vm1129_vm2 = vcmask (!%p380_p2), 1041408  }
   0x7   : > { %v2047_v5 = vpack.c.bf16 (!%p380_p2), %v485_v4, %v484_v2  ;;  %v707_v8 = vld [vmem:[%s2642_s4] sm:$0xff] (!%p380_p2)  ;;  %v708_v9 = vld [vmem:[%s2642_s4 + $0x8] sm:$0xff] (!%p380_p2)  ;;  %v2051_v11 = vpack.c.bf16 (!%p380_p2), %v487_v7, %v486_v6  ;;  %v488_v12 = vld [vmem:[%s2640_s2 + $0x30] sm:$0xff] (!%p380_p2)  ;;  %vm1080_vm3 = vcmask (!%p380_p2), 15360   ;;  %s2128_s28 = smov (!%p380_p2), 126  }
   0x8   : > { %2044 = vmatprep.subr.bf16.mxu0 (!%p380_p2), %v2043_v3  ;;  %v2059_v10 = vpack.c.bf16 (!%p380_p2), %v708_v9, %v707_v8  ;;  %v489_v13 = vld [vmem:[%s2640_s2 + $0x38] sm:$0xff] (!%p380_p2)  ;;  %v709_v31 = vld [vmem:[%s2642_s4 + $0x10] sm:$0xff] (!%p380_p2)  ;;  %v1761_v34 = vld [vmem:[%s2641_s3] ss:$0 sm:$0xff] (!%p380_p2) }
   0x9   : > { %2046 = vmatpush3.bf16.msra.mxu0 (!%p380_p2), %v2043_v3  ;;  %v2055_v15 = vpack.c.bf16 (!%p380_p2), %v489_v13, %v488_v12  ;;  %v710_v32 = vld [vmem:[%s2642_s4 + $0x18] sm:$0xff] (!%p380_p2) }
   0xa   : > { %2048 = vmatprep.subr.bf16.mxu0 (!%p380_p2), %v2047_v5  ;;  %2060 = vmatprep.subr.bf16.mxu1 (!%p380_p2), %v2059_v10  ;;  %v2063_v33 = vpack.c.bf16 (!%p380_p2), %v710_v32, %v709_v31 }
   0xb   : > { %2062 = vmatpush3.bf16.msra.mxu1 (!%p380_p2), %v2059_v10 }
   0xc   : > { %2064 = vmatprep.subr.bf16.mxu1 (!%p380_p2), %v2063_v33 }
   0xd   : > { %s2652_s29 = smov (!%p437_p3, %s1751_s29), 31  ;;  %2050 = vmatpush3.bf16.msra.mxu0 %v2047_v5 }
   0xe   : > { %s2226_s23 = sshll.u32 %s2652_s29, 3  ;;  %2052 = vmatprep.subr.bf16.mxu0 %v2051_v11 }
   0xf   : > { %s2238_s13 = scalar_lea.vmem %s2638_s0, %s2226_s23  ;;  %2066 = vmatpush3.bf16.msra.mxu1 %v2063_v33  ;;  %s2309_s27 = scalar_lea.vmem %s2649_s11, %s2226_s23 }
  0x10   : > { %v466_v14 = vld [vmem:[%s2238_s13] sm:$0xff]  ;;  %v467_v16 = vld [vmem:[%s2238_s13 + $0x8] sm:$0xff]  ;;  %v468_v17 = vld [vmem:[%s2238_s13 + $0x10] sm:$0xff]  ;;  %s2487_s22 = scalar_lea.vmem %s2639_s1, %s2226_s23  ;;  %s2535_s26 = scalar_lea.vmem %s2650_s12, %s2226_s23 }
  0x11   : > { %1929 = vmatprep.mubr.msk.f32.mxu0 %vm497_vm0, %v466_v14  ;;  %2054 = vmatpush3.bf16.msra.mxu0 %v2051_v11  ;;  %v469_v18 = vld [vmem:[%s2238_s13 + $0x18] sm:$0xff]  ;;  %v470_v19 = vld [vmem:[%s2238_s13 + $0x20] sm:$0xff]  ;;  %v471_v20 = vld [vmem:[%s2238_s13 + $0x28] sm:$0xff]  ;;  %s2601_s15 = scalar_lea.vmem %s2648_s10, %s2226_s23 }
  0x12   : > { %2056 = vmatprep.subr.bf16.mxu0 %v2055_v15  ;;  %v472_v21 = vld [vmem:[%s2238_s13 + $0x30] sm:$0xff]  ;;  %v473_v22 = vld [vmem:[%s2238_s13 + $0x38] sm:$0xff]  ;;  %v474_v23 = vld [vmem:[%s2238_s13 + $0x40] sm:$0xff] }
  0x13   : > { %v475_v24 = vld [vmem:[%s2238_s13 + $0x48] sm:$0xff]  ;;  %v476_v25 = vld [vmem:[%s2238_s13 + $0x50] sm:$0xff]  ;;  %v477_v26 = vld [vmem:[%s2238_s13 + $0x58] sm:$0xff] }
  0x14   : > { %v478_v27 = vld [vmem:[%s2238_s13 + $0x60] sm:$0xff]  ;;  %v479_v28 = vld [vmem:[%s2238_s13 + $0x68] sm:$0xff]  ;;  %v480_v29 = vld [vmem:[%s2238_s13 + $0x70] sm:$0xff] }
  0x15   : > { %2058 = vmatpush3.bf16.msra.mxu0 %v2055_v15  ;;  %v481_v30 = vld [vmem:[%s2238_s13 + $0x78] sm:$0xff] }
  0x18   : > { %1930 = vmatmul.mubr.msk.f32.vlgmr.msra.gmra.mrb[0].mxu0 %vm497_vm0, %v467_v16 }
  0x19   : > { %1932 = vmatprep.mubr.msk.f32.mxu0 %vm497_vm0, %v468_v17 }
  0x1c   : > { %1933 = vmatmul.mubr.msk.f32.gmra.mrb[2].mxu0 %vm497_vm0, %v469_v18 }
  0x1d   : > { %1935 = vmatprep.mubr.msk.f32.mxu0 %vm497_vm0, %v470_v19  ;;  %v1072_v19 = vld [vmem:[%s2644_s6] sm:$0x3] }
  0x1e   : > { %1985 = vmatprep.subr.msk.mxu1 %vm1129_vm2, %v1072_v19 }
  0x20   : > { %1936 = vmatmul.mubr.msk.f32.gmra.mrb[4].mxu0 %vm497_vm0, %v471_v20  ;;  %v2303_v20 = vld [vmem:[%s2643_s5] ss:$0 sm:$0xff] }
  0x21   : > { %1938 = vmatprep.mubr.msk.f32.mxu0 %vm497_vm0, %v472_v21 }
  0x24   : > { %1939 = vmatmul.mubr.msk.f32.gmra.mrb[6].mxu0 %vm497_vm0, %v473_v22 }
  0x25   : > { %1941 = vmatprep.mubr.msk.f32.mxu0 %vm497_vm0, %v474_v23 }
  0x28   : > { %1942 = vmatmul.mubr.msk.f32.gmra.mrb[8].mxu0 %vm497_vm0, %v475_v24 }
  0x29   : > { %1944 = vmatprep.mubr.msk.f32.mxu0 %vm497_vm0, %v476_v25 }
  0x2c   : > { %1945 = vmatmul.mubr.msk.f32.gmra.mrb[10].mxu0 %vm497_vm0, %v477_v26 }
  0x2d   : > { %1947 = vmatprep.mubr.msk.f32.mxu0 %vm497_vm0, %v478_v27 }
  0x30   : > { %1948 = vmatmul.mubr.msk.f32.gmra.mrb[12].mxu0 %vm497_vm0, %v479_v28 }
  0x31   : > { %1950 = vmatprep.mubr.msk.f32.mxu0 %vm497_vm0, %v480_v29 }
  0x34   : > { %1951 = vmatmul.mubr.msk.f32.gmra.mrb[14].mxu0 %vm497_vm0, %v481_v30 }
  0xeb   : > { %v1931_v35 = vpop.f32.mrb[0].mxu0 }
  0xec   : > { %v618_v36 = vadd.f32 %v1931_v35, %v1761_v34  ;;  %v612_v37 = vpop.f32.mrb[1].mxu0 }
  0xed   : > { %v613_v38 = vadd.f32 %v1761_v34, %v612_v37 }
  0xee   : > { %v692_v41 = vmax.f32 %v618_v36, 0.0 }
  0xef   : > { %v691_v39 = vmax.f32 %v613_v38, 0.0  ;;  %v1934_v40 = vpop.f32.mrb[2].mxu0 }
  0xf0   : > { %v628_v42 = vadd.f32 %v1934_v40, %v1761_v34  ;;  %v622_v43 = vpop.f32.mrb[3].mxu0 }
  0xf1   : > { %v623_v44 = vadd.f32 %v1761_v34, %v622_v43  ;;  %1961 = vmatprep.mubr.msk.f32.mxu1 %vm718_vm1, %v691_v39 }
  0xf2   : > { %1962 = vmatmul.mubr.msk.f32.vlgmr.msra.gmra.mrb[0].mxu1 %vm718_vm1, %v692_v41  ;;  %v694_v47 = vmax.f32 %v628_v42, 0.0 }
  0xf3   : > { %v693_v45 = vmax.f32 %v623_v44, 0.0  ;;  %v1937_v46 = vpop.f32.mrb[4].mxu0  ;;  %1986 = vmatpush3.msk.msra.mxu1 %vm1129_vm2, %v1072_v19 }
  0xf4   : > { %v638_v48 = vadd.f32 %v1937_v46, %v1761_v34  ;;  %v632_v49 = vpop.f32.mrb[5].mxu0 }
  0xf5   : > { %v633_v50 = vadd.f32 %v1761_v34, %v632_v49  ;;  %1964 = vmatprep.mubr.msk.f32.mxu1 %vm718_vm1, %v693_v45 }
  0xf6   : > { %v696_v51 = vmax.f32 %v638_v48, 0.0  ;;  %1965 = vmatmul.mubr.msk.f32.gmra.mrb[2].mxu1 %vm718_vm1, %v694_v47 }
  0xf7   : > { %v695_v52 = vmax.f32 %v633_v50, 0.0  ;;  %v1940_v53 = vpop.f32.mrb[6].mxu0 }
  0xf8   : > { %v648_v54 = vadd.f32 %v1940_v53, %v1761_v34  ;;  %v642_v55 = vpop.f32.mrb[7].mxu0 }
  0xf9   : > { %v643_v56 = vadd.f32 %v1761_v34, %v642_v55  ;;  %1967 = vmatprep.mubr.msk.f32.mxu1 %vm718_vm1, %v695_v52 }
  0xfa   : > { %v698_v57 = vmax.f32 %v648_v54, 0.0  ;;  %1968 = vmatmul.mubr.msk.f32.gmra.mrb[4].mxu1 %vm718_vm1, %v696_v51 }
  0xfb   : > { %v697_v58 = vmax.f32 %v643_v56, 0.0  ;;  %v1943_v59 = vpop.f32.mrb[8].mxu0 }
  0xfc   : > { %v658_v60 = vadd.f32 %v1943_v59, %v1761_v34  ;;  %v652_v61 = vpop.f32.mrb[9].mxu0 }
  0xfd   : > { %v653_v62 = vadd.f32 %v1761_v34, %v652_v61  ;;  %1970 = vmatprep.mubr.msk.f32.mxu1 %vm718_vm1, %v697_v58 }
  0xfe   : > { %v700_v63 = vmax.f32 %v658_v60, 0.0  ;;  %1971 = vmatmul.mubr.msk.f32.gmra.mrb[6].mxu1 %vm718_vm1, %v698_v57 }
  0xff   : > { %v699_v0 = vmax.f32 %v653_v62, 0.0  ;;  %v1946_v1 = vpop.f32.mrb[10].mxu0 }
 0x100   : > { %v668_v2 = vadd.f32 %v1946_v1, %v1761_v34  ;;  %v662_v3 = vpop.f32.mrb[11].mxu0 }
 0x101   : > { %v663_v4 = vadd.f32 %v1761_v34, %v662_v3  ;;  %1973 = vmatprep.mubr.msk.f32.mxu1 %vm718_vm1, %v699_v0 }
 0x102   : > { %v702_v5 = vmax.f32 %v668_v2, 0.0  ;;  %1974 = vmatmul.mubr.msk.f32.gmra.mrb[8].mxu1 %vm718_vm1, %v700_v63 }
 0x103   : > { %v701_v6 = vmax.f32 %v663_v4, 0.0  ;;  %v1949_v7 = vpop.f32.mrb[12].mxu0 }
 0x104   : > { %v678_v8 = vadd.f32 %v1949_v7, %v1761_v34  ;;  %v672_v9 = vpop.f32.mrb[13].mxu0 }
 0x105   : > { %v673_v10 = vadd.f32 %v1761_v34, %v672_v9  ;;  %1976 = vmatprep.mubr.msk.f32.mxu1 %vm718_vm1, %v701_v6 }
 0x106   : > { %v704_v11 = vmax.f32 %v678_v8, 0.0  ;;  %1977 = vmatmul.mubr.msk.f32.gmra.mrb[10].mxu1 %vm718_vm1, %v702_v5 }
 0x107   : > { %v703_v12 = vmax.f32 %v673_v10, 0.0  ;;  %v1952_v13 = vpop.f32.mrb[14].mxu0 }
 0x108   : > { %v688_v14 = vadd.f32 %v1952_v13, %v1761_v34  ;;  %v682_v15 = vpop.f32.mrb[15].mxu0 }
 0x109   : > { %v683_v16 = vadd.f32 %v1761_v34, %v682_v15  ;;  %1979 = vmatprep.mubr.msk.f32.mxu1 %vm718_vm1, %v703_v12 }
 0x10a   : > { %v706_v17 = vmax.f32 %v688_v14, 0.0  ;;  %1980 = vmatmul.mubr.msk.f32.gmra.mrb[12].mxu1 %vm718_vm1, %v704_v11 }
 0x10b   : > { %v705_v18 = vmax.f32 %v683_v16, 0.0 }
 0x10d   : > { %1982 = vmatprep.mubr.msk.f32.mxu1 %vm718_vm1, %v705_v18 }
 0x10e   : > { %1983 = vmatmul.mubr.msk.f32.gmra.mrb[14].mxu1 %vm718_vm1, %v706_v17 }
 0x1c5   : > { %v1963_v21 = vpop.f32.mrb[0].mxu1 }
 0x1c6   : > { %v2312_v22 = vadd.f32 %v1963_v21, %v2303_v20  ;;  %v833_v23 = vpop.f32.mrb[1].mxu1 }
 0x1c7   : > { %v2315_v24 = vadd.f32 %v2303_v20, %v833_v23 }
 0x1c8   : > { %v913_v25 = vmul.f32 0.5, %v2312_v22  ;;  %1515 = vst.msk [vmem:[%s2309_s27 + $0x8] sm:$0xff] %vm1080_vm3, %v2312_v22 }
 0x1c9   : > { %v912_v26 = vmul.f32 0.5, %v2315_v24  ;;  %1514 = vst.msk [vmem:[%s2309_s27] sm:$0xff] %vm1080_vm3, %v2315_v24  ;;  %v1966_v27 = vpop.f32.mrb[2].mxu1 }
 0x1ca   : > { %v2326_v28 = vadd.f32 %v1966_v27, %v2303_v20  ;;  %v843_v29 = vpop.f32.mrb[3].mxu1  ;;  %v930_v32 = vmul.f32 1.442695, %v913_v25 }
 0x1cb   : > { %v928_v30 = vmul.f32 1.442695, %v912_v26  ;;  %v2329_v31 = vadd.f32 %v2303_v20, %v843_v29 }
 0x1cc   : > { %v915_v33 = vmul.f32 0.5, %v2326_v28  ;;  %1517 = vst.msk [vmem:[%s2309_s27 + $0x18] sm:$0xff] %vm1080_vm3, %v2326_v28 }
 0x1cd   : > { %2088 = vpow2.f32 %v928_v30  ;;  %v914_v34 = vmul.f32 0.5, %v2329_v31  ;;  %1516 = vst.msk [vmem:[%s2309_s27 + $0x10] sm:$0xff] %vm1080_vm3, %v2329_v31  ;;  %v1969_v35 = vpop.f32.mrb[4].mxu1 }
 0x1ce   : > { %v2340_v36 = vadd.f32 %v1969_v35, %v2303_v20  ;;  %v853_v37 = vpop.f32.mrb[5].mxu1  ;;  %2090 = vpow2.f32 %v930_v32  ;;  %v934_v40 = vmul.f32 1.442695, %v915_v33 }
 0x1cf   : > { %v932_v38 = vmul.f32 1.442695, %v914_v34  ;;  %v2343_v39 = vadd.f32 %v2303_v20, %v853_v37 }
 0x1d0   : > { %v917_v41 = vmul.f32 0.5, %v2340_v36  ;;  %1519 = vst.msk [vmem:[%s2309_s27 + $0x28] sm:$0xff] %vm1080_vm3, %v2340_v36 }
 0x1d1   : > { %2092 = vpow2.f32 %v932_v38  ;;  %v916_v42 = vmul.f32 0.5, %v2343_v39  ;;  %1518 = vst.msk [vmem:[%s2309_s27 + $0x20] sm:$0xff] %vm1080_vm3, %v2343_v39  ;;  %v1972_v43 = vpop.f32.mrb[6].mxu1 }
 0x1d2   : > { %v2354_v44 = vadd.f32 %v1972_v43, %v2303_v20  ;;  %v863_v45 = vpop.f32.mrb[7].mxu1  ;;  %2094 = vpow2.f32 %v934_v40  ;;  %v938_v48 = vmul.f32 1.442695, %v917_v41  ;;  %v1294_v43 = vld [vmem:[%s2646_s8] sm:$0xff] }
 0x1d3   : > { %v936_v46 = vmul.f32 1.442695, %v916_v42  ;;  %v2357_v47 = vadd.f32 %v2303_v20, %v863_v45  ;;  %v1295_v45 = vld [vmem:[%s2646_s8 + $0x8] sm:$0xff] }
 0x1d4   : > { %v919_v49 = vmul.f32 0.5, %v2354_v44  ;;  %1521 = vst.msk [vmem:[%s2309_s27 + $0x38] sm:$0xff] %vm1080_vm3, %v2354_v44 }
 0x1d5   : > { %2096 = vpow2.f32 %v936_v46  ;;  %v918_v50 = vmul.f32 0.5, %v2357_v47  ;;  %1520 = vst.msk [vmem:[%s2309_s27 + $0x30] sm:$0xff] %vm1080_vm3, %v2357_v47  ;;  %v1975_v51 = vpop.f32.mrb[8].mxu1  ;;  %v1296_v46 = vld [vmem:[%s2646_s8 + $0x10] sm:$0xff] }
 0x1d6   : > { %v2368_v52 = vadd.f32 %v1975_v51, %v2303_v20  ;;  %v873_v53 = vpop.f32.mrb[9].mxu1  ;;  %2098 = vpow2.f32 %v938_v48  ;;  %v942_v57 = vmul.f32 1.442695, %v919_v49  ;;  %v2067_v48 = vpack.c.bf16 %v1295_v45, %v1294_v43  ;;  %v1297_v49 = vld [vmem:[%s2646_s8 + $0x18] sm:$0xff]  ;;  %v960_v51 = vld [vmem:[%s2487_s22] sm:$0xff]  ;;  %v974_v43 = vld [vmem:[%s2487_s22 + $0x70] sm:$0xff] }
 0x1d7   : > { %v2089_v54 = vpop.eup %2088  ;;  %v940_v55 = vmul.f32 1.442695, %v918_v50  ;;  %v2371_v56 = vadd.f32 %v2303_v20, %v873_v53  ;;  %v2071_v50 = vpack.c.bf16 %v1297_v49, %v1296_v46 }
 0x1d8   : > { %v921_v58 = vmul.f32 0.5, %v2368_v52  ;;  %1523 = vst.msk [vmem:[%s2309_s27 + $0x48] sm:$0xff] %vm1080_vm3, %v2368_v52  ;;  %992 = vrot.lane.b32.xlu0 %v2089_v54, %s2128_s28  ;;  %v2091_v61 = vpop.eup %2090  ;;  %2068 = vmatprep.subr.bf16.mxu0 %v2067_v48 }
 0x1d9   : > { %2100 = vpow2.f32 %v940_v55  ;;  %v920_v59 = vmul.f32 0.5, %v2371_v56  ;;  %1522 = vst.msk [vmem:[%s2309_s27 + $0x40] sm:$0xff] %vm1080_vm3, %v2371_v56  ;;  %v1978_v60 = vpop.f32.mrb[10].mxu1  ;;  %2075 = vmatprep.subr.bf16.mxu1 %v2067_v48  ;;  %2070 = vmatpush3.bf16.msra.mxu0 %v2067_v48  ;;  %v962_v55 = vld [vmem:[%s2487_s22 + $0x10] sm:$0xff] }
 0x1da   : > { %v2383_v62 = vadd.f32 %v1978_v60, %v2303_v20  ;;  %v883_v63 = vpop.f32.mrb[11].mxu1  ;;  %2102 = vpow2.f32 %v942_v57  ;;  %v946_v3 = vmul.f32 1.442695, %v921_v58  ;;  %2072 = vmatprep.subr.bf16.mxu0 %v2071_v50  ;;  %v961_v57 = vld [vmem:[%s2487_s22 + $0x8] sm:$0xff] }
 0x1db   : > { %v2093_v0 = vpop.eup %2092  ;;  %v944_v1 = vmul.f32 1.442695, %v920_v59  ;;  %v2386_v2 = vadd.f32 %v2303_v20, %v883_v63 }
 0x1dc   : > { %v923_v4 = vmul.f32 0.5, %v2383_v62  ;;  %1525 = vst.msk [vmem:[%s2309_s27 + $0x58] sm:$0xff] %vm1080_vm3, %v2383_v62  ;;  %996 = vrot.lane.b32.xlu1 %v2093_v0, %s2128_s28  ;;  %994 = vrot.lane.b32.xlu0 %v2091_v61, %s2128_s28  ;;  %v2095_v7 = vpop.eup %2094  ;;  %v963_v0 = vld [vmem:[%s2487_s22 + $0x18] sm:$0xff] }
 0x1dd   : > { %2104 = vpow2.f32 %v944_v1  ;;  %v922_v5 = vmul.f32 0.5, %v2386_v2  ;;  %1524 = vst.msk [vmem:[%s2309_s27 + $0x50] sm:$0xff] %vm1080_vm3, %v2386_v2  ;;  %v1981_v6 = vpop.f32.mrb[12].mxu1  ;;  %2074 = vmatpush3.bf16.msra.mxu0 %v2071_v50  ;;  %v964_v1 = vld [vmem:[%s2487_s22 + $0x20] sm:$0xff] }
 0x1de   : > { %v2399_v8 = vadd.f32 %v1981_v6, %v2303_v20  ;;  %v893_v9 = vpop.f32.mrb[13].mxu1  ;;  %2106 = vpow2.f32 %v946_v3  ;;  %v950_v13 = vmul.f32 1.442695, %v923_v4 }
 0x1df   : > { %v2097_v10 = vpop.eup %2096  ;;  %v948_v11 = vmul.f32 1.442695, %v922_v5  ;;  %v2402_v12 = vadd.f32 %v2303_v20, %v893_v9 }
 0x1e0   : > { %v925_v14 = vmul.f32 0.5, %v2399_v8  ;;  %1527 = vst.msk [vmem:[%s2309_s27 + $0x68] sm:$0xff] %vm1080_vm3, %v2399_v8  ;;  %998 = vrot.lane.b32.xlu1 %v2095_v7, %s2128_s28  ;;  %1000 = vrot.lane.b32.xlu0 %v2097_v10, %s2128_s28  ;;  %v2099_v17 = vpop.eup %2098  ;;  %v966_v10 = vld [vmem:[%s2487_s22 + $0x30] sm:$0xff] }
 0x1e1   : > { %2108 = vpow2.f32 %v948_v11  ;;  %v924_v15 = vmul.f32 0.5, %v2402_v12  ;;  %1526 = vst.msk [vmem:[%s2309_s27 + $0x60] sm:$0xff] %vm1080_vm3, %v2402_v12  ;;  %v1984_v16 = vpop.f32.mrb[14].mxu1 }
 0x1e2   : > { %v2415_v18 = vadd.f32 %v1984_v16, %v2303_v20  ;;  %v903_v19 = vpop.f32.mrb[15].mxu1  ;;  %2110 = vpow2.f32 %v950_v13  ;;  %v954_v26 = vmul.f32 1.442695, %v925_v14  ;;  %v967_v16 = vld [vmem:[%s2487_s22 + $0x38] sm:$0xff] }
 0x1e3   : > { %v2101_v21 = vpop.eup %2100  ;;  %v952_v23 = vmul.f32 1.442695, %v924_v15  ;;  %v2418_v25 = vadd.f32 %v2303_v20, %v903_v19 }
 0x1e4   : > { %1529 = vst.msk [vmem:[%s2309_s27 + $0x78] sm:$0xff] %vm1080_vm3, %v2415_v18  ;;  %1002 = vrot.lane.b32.xlu1 %v2099_v17, %s2128_s28  ;;  %1004 = vrot.lane.b32.xlu0 %v2101_v21, %s2128_s28  ;;  %v927_v27 = vmul.f32 0.5, %v2415_v18  ;;  %v2103_v30 = vpop.eup %2102  ;;  %v968_v17 = vld [vmem:[%s2487_s22 + $0x40] sm:$0xff] }
 0x1e5   : > { %2112 = vpow2.f32 %v952_v23  ;;  %v926_v29 = vmul.f32 0.5, %v2418_v25  ;;  %1528 = vst.msk [vmem:[%s2309_s27 + $0x70] sm:$0xff] %vm1080_vm3, %v2418_v25 }
 0x1e6   : > { %2114 = vpow2.f32 %v954_v26  ;;  %v958_v33 = vmul.f32 1.442695, %v927_v27  ;;  %v969_v27 = vld [vmem:[%s2487_s22 + $0x48] sm:$0xff] }
 0x1e7   : > { %v2105_v20 = vpop.eup %2104  ;;  %v956_v32 = vmul.f32 1.442695, %v926_v29  ;;  %v970_v29 = vld [vmem:[%s2487_s22 + $0x50] sm:$0xff] }
 0x1e8   : > { %1006 = vrot.lane.b32.xlu1 %v2103_v30, %s2128_s28  ;;  %1008 = vrot.lane.b32.xlu0 %v2105_v20, %s2128_s28  ;;  %v2107_v34 = vpop.eup %2106 }
 0x1e9   : > { %2116 = vpow2.f32 %v956_v32 }
 0x1ea   : > { %2118 = vpow2.f32 %v958_v33 }
 0x1eb   : > { %v2109_v35 = vpop.eup %2108 }
 0x1ec   : > { %1010 = vrot.lane.b32.xlu1 %v2107_v34, %s2128_s28  ;;  %1012 = vrot.lane.b32.xlu0 %v2109_v35, %s2128_s28  ;;  %v2111_v37 = vpop.eup %2110  ;;  %v971_v34 = vld [vmem:[%s2487_s22 + $0x58] sm:$0xff]  ;;  %v972_v35 = vld [vmem:[%s2487_s22 + $0x60] sm:$0xff] }
 0x1ef   : > { %v2113_v38 = vpop.eup %2112 }
 0x1f0   : > { %1014 = vrot.lane.b32.xlu1 %v2111_v37, %s2128_s28  ;;  %1016 = vrot.lane.b32.xlu0 %v2113_v38, %s2128_s28  ;;  %v2115_v40 = vpop.eup %2114 }
 0x1f3   : > { %v2117_v41 = vpop.eup %2116 }
 0x1f4   : > { %1018 = vrot.lane.b32.xlu1 %v2115_v40, %s2128_s28  ;;  %1020 = vrot.lane.b32.xlu0 %v2117_v41, %s2128_s28  ;;  %v2119_v42 = vpop.eup %2118 }
 0x1f8   : > { %1022 = vrot.lane.b32.xlu1 %v2119_v42, %s2128_s28  ;;  %1546 = vrot.lane.b32.xlu0 %v2315_v24, %s2128_s28  ;;  %v973_v42 = vld [vmem:[%s2487_s22 + $0x68] sm:$0xff] }
 0x1fc   : > { %1548 = vrot.lane.b32.xlu1 %v2312_v22, %s2128_s28  ;;  %1550 = vrot.lane.b32.xlu0 %v2329_v31, %s2128_s28 }
 0x200   : > { %1552 = vrot.lane.b32.xlu1 %v2326_v28, %s2128_s28  ;;  %1554 = vrot.lane.b32.xlu0 %v2343_v39, %s2128_s28 }
 0x204   : > { %1556 = vrot.lane.b32.xlu1 %v2340_v36, %s2128_s28  ;;  %1558 = vrot.lane.b32.xlu0 %v2357_v47, %s2128_s28 }
 0x208   : > { %1560 = vrot.lane.b32.xlu1 %v2354_v44, %s2128_s28  ;;  %1562 = vrot.lane.b32.xlu0 %v2371_v56, %s2128_s28 }
 0x20c   : > { %1564 = vrot.lane.b32.xlu1 %v2368_v52, %s2128_s28  ;;  %1566 = vrot.lane.b32.xlu0 %v2386_v2, %s2128_s28 }
 0x210   : > { %1568 = vrot.lane.b32.xlu1 %v2383_v62, %s2128_s28  ;;  %1570 = vrot.lane.b32.xlu0 %v2402_v12, %s2128_s28 }
 0x214   : > { %1572 = vrot.lane.b32.xlu1 %v2399_v8, %s2128_s28  ;;  %1574 = vrot.lane.b32.xlu0 %v2418_v25, %s2128_s28 }
 0x218   : > { %1576 = vrot.lane.b32.xlu1 %v2415_v18, %s2128_s28 }
 0x24a   : > { %v993_v53 = vpop.permute.xlu0 %992 }
 0x24b   : > { %v1040_v54 = vmul.f32 %v993_v53, %v960_v51 }
 0x24d   : > { %v1056_v58 = vadd.f32 %v1040_v54, %v2315_v24  ;;  %v965_v24 = vld [vmem:[%s2487_s22 + $0x28] sm:$0xff] }
 0x24e   : > { %v997_v59 = vpop.permute.xlu1 %996  ;;  %v995_v60 = vpop.permute.xlu0 %994 }
 0x24f   : > { %v1042_v61 = vmul.f32 %v997_v59, %v962_v55  ;;  %v1041_v63 = vmul.f32 %v995_v60, %v961_v57  ;;  %1987 = vmatprep.mubr.msk.f32.mxu1 %vm1080_vm3, %v1056_v58 }
 0x251   : > { %v1058_v3 = vadd.f32 %v1042_v61, %v2329_v31  ;;  %v1057_v4 = vadd.f32 %v1041_v63, %v2312_v22 }
 0x252   : > { %v999_v5 = vpop.permute.xlu1 %998  ;;  %v1001_v6 = vpop.permute.xlu0 %1000 }
 0x253   : > { %v1043_v7 = vmul.f32 %v999_v5, %v963_v0  ;;  %v1044_v9 = vmul.f32 %v1001_v6, %v964_v1  ;;  %1988 = vmatmul.mubr.msk.f32.vlgmr.msra.gmra.mrb[16].mxu1 %vm1080_vm3, %v1057_v4 }
 0x254   : > { %1990 = vmatprep.mubr.msk.f32.mxu1 %vm1080_vm3, %v1058_v3  ;;  %2077 = vmatpush3.bf16.msra.mxu1 %v2067_v48 }
 0x255   : > { %v1059_v11 = vadd.f32 %v1043_v7, %v2326_v28  ;;  %v1060_v13 = vadd.f32 %v1044_v9, %v2343_v39  ;;  %2076 = vmatprep.subr.bf16.mxu1 %v2071_v50  ;;  %v1795_v7 = vld [vmem:[%s2645_s7] ss:$0 sm:$0xff] }
 0x256   : > { %v1003_v31 = vpop.permute.xlu1 %1002  ;;  %v1005_v22 = vpop.permute.xlu0 %1004 }
 0x257   : > { %v1045_v14 = vmul.f32 %v1003_v31, %v965_v24  ;;  %v1046_v15 = vmul.f32 %v1005_v22, %v966_v10  ;;  %1991 = vmatmul.mubr.msk.f32.gmra.mrb[18].mxu1 %vm1080_vm3, %v1059_v11 }
 0x258   : > { %1993 = vmatprep.mubr.msk.f32.mxu1 %vm1080_vm3, %v1060_v13  ;;  %2078 = vmatpush3.bf16.msra.mxu1 %v2071_v50  ;;  %v975_v50 = vld [vmem:[%s2487_s22 + $0x78] sm:$0xff] }
 0x259   : > { %v1061_v19 = vadd.f32 %v1045_v14, %v2340_v36  ;;  %v1062_v28 = vadd.f32 %v1046_v15, %v2357_v47 }
 0x25a   : > { %v1007_v21 = vpop.permute.xlu1 %1006  ;;  %v1009_v39 = vpop.permute.xlu0 %1008 }
 0x25b   : > { %v1047_v23 = vmul.f32 %v1007_v21, %v967_v16  ;;  %v1048_v26 = vmul.f32 %v1009_v39, %v968_v17  ;;  %1994 = vmatmul.mubr.msk.f32.gmra.mrb[20].mxu1 %vm1080_vm3, %v1061_v19 }
 0x25c   : > { %1996 = vmatprep.mubr.msk.f32.mxu1 %vm1080_vm3, %v1062_v28 }
 0x25d   : > { %v1063_v30 = vadd.f32 %v1047_v23, %v2354_v44  ;;  %v1064_v20 = vadd.f32 %v1048_v26, %v2371_v56 }
 0x25e   : > { %v1011_v32 = vpop.permute.xlu1 %1010  ;;  %v1013_v36 = vpop.permute.xlu0 %1012 }
 0x25f   : > { %v1049_v47 = vmul.f32 %v1011_v32, %v969_v27  ;;  %v1050_v33 = vmul.f32 %v1013_v36, %v970_v29  ;;  %1997 = vmatmul.mubr.msk.f32.gmra.mrb[22].mxu1 %vm1080_vm3, %v1063_v30 }
 0x260   : > { %1999 = vmatprep.mubr.msk.f32.mxu1 %vm1080_vm3, %v1064_v20 }
 0x261   : > { %v1065_v37 = vadd.f32 %v1049_v47, %v2368_v52  ;;  %v1066_v38 = vadd.f32 %v1050_v33, %v2386_v2 }
 0x262   : > { %v1015_v40 = vpop.permute.xlu1 %1014  ;;  %v1017_v44 = vpop.permute.xlu0 %1016 }
 0x263   : > { %v1051_v56 = vmul.f32 %v1015_v40, %v971_v34  ;;  %v1052_v41 = vmul.f32 %v1017_v44, %v972_v35  ;;  %2000 = vmatmul.mubr.msk.f32.gmra.mrb[24].mxu1 %vm1080_vm3, %v1065_v37 }
 0x264   : > { %2002 = vmatprep.mubr.msk.f32.mxu1 %vm1080_vm3, %v1066_v38 }
 0x265   : > { %v1067_v45 = vadd.f32 %v1051_v56, %v2383_v62  ;;  %v1068_v46 = vadd.f32 %v1052_v41, %v2402_v12 }
 0x266   : > { %v1019_v48 = vpop.permute.xlu1 %1018  ;;  %v1021_v52 = vpop.permute.xlu0 %1020 }
 0x267   : > { %v1053_v49 = vmul.f32 %v1019_v48, %v973_v42  ;;  %v1054_v2 = vmul.f32 %v1021_v52, %v974_v43  ;;  %2003 = vmatmul.mubr.msk.f32.gmra.mrb[26].mxu1 %vm1080_vm3, %v1067_v45 }
 0x268   : > { %2005 = vmatprep.mubr.msk.f32.mxu1 %vm1080_vm3, %v1068_v46 }
 0x269   : > { %v1069_v62 = vadd.f32 %v1053_v49, %v2399_v8  ;;  %v1070_v12 = vadd.f32 %v1054_v2, %v2418_v25 }
 0x26a   : > { %v1023_v51 = vpop.permute.xlu1 %1022  ;;  %v1547_v53 = vpop.permute.xlu0 %1546 }
 0x26b   : > { %v1055_v54 = vmul.f32 %v1023_v51, %v975_v50  ;;  %1594 = vst.msk [vmem:[%s2535_s26] sm:$0xff] %vm1080_vm3, %v1547_v53  ;;  %2006 = vmatmul.mubr.msk.f32.gmra.mrb[28].mxu1 %vm1080_vm3, %v1069_v62 }
 0x26c   : > { %2008 = vmatprep.mubr.msk.f32.mxu1 %vm1080_vm3, %v1070_v12 }
 0x26d   : > { %v1071_v55 = vadd.f32 %v1055_v54, %v2415_v18 }
 0x26e   : > { %v1549_v57 = vpop.permute.xlu1 %1548  ;;  %v1551_v8 = vpop.permute.xlu0 %1550 }
 0x26f   : > { %1595 = vst.msk [vmem:[%s2535_s26 + $0x8] sm:$0xff] %vm1080_vm3, %v1549_v57  ;;  %1596 = vst.msk [vmem:[%s2535_s26 + $0x10] sm:$0xff] %vm1080_vm3, %v1551_v8  ;;  %2009 = vmatmul.mubr.msk.f32.gmra.mrb[30].mxu1 %vm1080_vm3, %v1071_v55  ;;  %v1813_v57 = vld [vmem:[%s2647_s9] ss:$0 sm:$0xff] }
 0x272   : > { %v1553_v25 = vpop.permute.xlu1 %1552  ;;  %v1555_v58 = vpop.permute.xlu0 %1554 }
 0x273   : > { %1597 = vst.msk [vmem:[%s2535_s26 + $0x18] sm:$0xff] %vm1080_vm3, %v1553_v25  ;;  %1598 = vst.msk [vmem:[%s2535_s26 + $0x20] sm:$0xff] %vm1080_vm3, %v1555_v58 }
 0x276   : > { %v1557_v18 = vpop.permute.xlu1 %1556  ;;  %v1559_v59 = vpop.permute.xlu0 %1558 }
 0x277   : > { %1599 = vst.msk [vmem:[%s2535_s26 + $0x28] sm:$0xff] %vm1080_vm3, %v1557_v18  ;;  %1600 = vst.msk [vmem:[%s2535_s26 + $0x30] sm:$0xff] %vm1080_vm3, %v1559_v59 }
 0x27a   : > { %v1561_v60 = vpop.permute.xlu1 %1560  ;;  %v1563_v61 = vpop.permute.xlu0 %1562 }
 0x27b   : > { %1601 = vst.msk [vmem:[%s2535_s26 + $0x38] sm:$0xff] %vm1080_vm3, %v1561_v60  ;;  %1602 = vst.msk [vmem:[%s2535_s26 + $0x40] sm:$0xff] %vm1080_vm3, %v1563_v61 }
 0x27e   : > { %v1565_v63 = vpop.permute.xlu1 %1564  ;;  %v1567_v0 = vpop.permute.xlu0 %1566 }
 0x27f   : > { %1603 = vst.msk [vmem:[%s2535_s26 + $0x48] sm:$0xff] %vm1080_vm3, %v1565_v63  ;;  %1604 = vst.msk [vmem:[%s2535_s26 + $0x50] sm:$0xff] %vm1080_vm3, %v1567_v0 }
 0x282   : > { %v1569_v1 = vpop.permute.xlu1 %1568  ;;  %v1571_v3 = vpop.permute.xlu0 %1570 }
 0x283   : > { %1605 = vst.msk [vmem:[%s2535_s26 + $0x58] sm:$0xff] %vm1080_vm3, %v1569_v1  ;;  %1606 = vst.msk [vmem:[%s2535_s26 + $0x60] sm:$0xff] %vm1080_vm3, %v1571_v3 }
 0x286   : > { %v1573_v4 = vpop.permute.xlu1 %1572  ;;  %v1575_v5 = vpop.permute.xlu0 %1574 }
 0x287   : > { %1607 = vst.msk [vmem:[%s2535_s26 + $0x68] sm:$0xff] %vm1080_vm3, %v1573_v4  ;;  %1608 = vst.msk [vmem:[%s2535_s26 + $0x70] sm:$0xff] %vm1080_vm3, %v1575_v5 }
 0x28a   : > { %v1577_v6 = vpop.permute.xlu1 %1576 }
 0x28b   : > { %1609 = vst.msk [vmem:[%s2535_s26 + $0x78] sm:$0xff] %vm1080_vm3, %v1577_v6 }
 0x326   : > { %v1989_v9 = vpop.f32.mrb[16].mxu1 }
 0x327   : > { %v1205_v24 = vadd.f32 %v1989_v9, %v1795_v7  ;;  %v1199_v10 = vpop.f32.mrb[17].mxu1 }
 0x328   : > { %v1200_v11 = vadd.f32 %v1795_v7, %v1199_v10 }
 0x329   : > { %v1279_v22 = vmax.f32 %v1205_v24, 0.0 }
 0x32a   : > { %v1278_v13 = vmax.f32 %v1200_v11, 0.0  ;;  %v1992_v31 = vpop.f32.mrb[18].mxu1 }
 0x32b   : > { %v1215_v14 = vadd.f32 %v1992_v31, %v1795_v7  ;;  %v1209_v15 = vpop.f32.mrb[19].mxu1 }
 0x32c   : > { %v1210_v16 = vadd.f32 %v1795_v7, %v1209_v15  ;;  %2019 = vmatprep.mubr.msk.f32.mxu0 %vm718_vm1, %v1278_v13 }
 0x32d   : > { %2020 = vmatmul.mubr.msk.f32.vlgmr.msra.gmra.mrb[16].mxu0 %vm718_vm1, %v1279_v22  ;;  %v1281_v28 = vmax.f32 %v1215_v14, 0.0 }
 0x32e   : > { %v1280_v17 = vmax.f32 %v1210_v16, 0.0  ;;  %v1995_v19 = vpop.f32.mrb[20].mxu1 }
 0x32f   : > { %v1225_v21 = vadd.f32 %v1995_v19, %v1795_v7  ;;  %v1219_v39 = vpop.f32.mrb[21].mxu1 }
 0x330   : > { %v1220_v23 = vadd.f32 %v1795_v7, %v1219_v39  ;;  %2022 = vmatprep.mubr.msk.f32.mxu0 %vm718_vm1, %v1280_v17 }
 0x331   : > { %2023 = vmatmul.mubr.msk.f32.gmra.mrb[18].mxu0 %vm718_vm1, %v1281_v28  ;;  %v1283_v29 = vmax.f32 %v1225_v21, 0.0 }
 0x332   : > { %v1282_v26 = vmax.f32 %v1220_v23, 0.0  ;;  %v1998_v27 = vpop.f32.mrb[22].mxu1 }
 0x333   : > { %v1235_v30 = vadd.f32 %v1998_v27, %v1795_v7  ;;  %v1229_v20 = vpop.f32.mrb[23].mxu1 }
 0x334   : > { %v1230_v32 = vadd.f32 %v1795_v7, %v1229_v20  ;;  %2025 = vmatprep.mubr.msk.f32.mxu0 %vm718_vm1, %v1282_v26 }
 0x335   : > { %2026 = vmatmul.mubr.msk.f32.gmra.mrb[20].mxu0 %vm718_vm1, %v1283_v29  ;;  %v1285_v33 = vmax.f32 %v1235_v30, 0.0 }
 0x336   : > { %v1284_v36 = vmax.f32 %v1230_v32, 0.0  ;;  %v2001_v47 = vpop.f32.mrb[24].mxu1 }
 0x337   : > { %v1245_v34 = vadd.f32 %v2001_v47, %v1795_v7  ;;  %v1239_v35 = vpop.f32.mrb[25].mxu1 }
 0x338   : > { %v1240_v37 = vadd.f32 %v1795_v7, %v1239_v35  ;;  %2028 = vmatprep.mubr.msk.f32.mxu0 %vm718_vm1, %v1284_v36 }
 0x339   : > { %2029 = vmatmul.mubr.msk.f32.gmra.mrb[22].mxu0 %vm718_vm1, %v1285_v33  ;;  %v1287_v44 = vmax.f32 %v1245_v34, 0.0 }
 0x33a   : > { %v1286_v38 = vmax.f32 %v1240_v37, 0.0  ;;  %v2004_v40 = vpop.f32.mrb[26].mxu1 }
 0x33b   : > { %v1255_v56 = vadd.f32 %v2004_v40, %v1795_v7  ;;  %v1249_v41 = vpop.f32.mrb[27].mxu1 }
 0x33c   : > { %v1250_v42 = vadd.f32 %v1795_v7, %v1249_v41  ;;  %2031 = vmatprep.mubr.msk.f32.mxu0 %vm718_vm1, %v1286_v38 }
 0x33d   : > { %2032 = vmatmul.mubr.msk.f32.gmra.mrb[24].mxu0 %vm718_vm1, %v1287_v44  ;;  %v1289_v46 = vmax.f32 %v1255_v56, 0.0 }
 0x33e   : > { %v1288_v43 = vmax.f32 %v1250_v42, 0.0  ;;  %v2007_v45 = vpop.f32.mrb[28].mxu1 }
 0x33f   : > { %v1265_v48 = vadd.f32 %v2007_v45, %v1795_v7  ;;  %v1259_v52 = vpop.f32.mrb[29].mxu1 }
 0x340   : > { %v1260_v49 = vadd.f32 %v1795_v7, %v1259_v52  ;;  %2034 = vmatprep.mubr.msk.f32.mxu0 %vm718_vm1, %v1288_v43 }
 0x341   : > { %2035 = vmatmul.mubr.msk.f32.gmra.mrb[26].mxu0 %vm718_vm1, %v1289_v46  ;;  %v1291_v62 = vmax.f32 %v1265_v48, 0.0 }
 0x342   : > { %v1290_v2 = vmax.f32 %v1260_v49, 0.0  ;;  %v2010_v50 = vpop.f32.mrb[30].mxu1 }
 0x343   : > { %v1275_v12 = vadd.f32 %v2010_v50, %v1795_v7  ;;  %v1269_v51 = vpop.f32.mrb[31].mxu1 }
 0x344   : > { %v1270_v53 = vadd.f32 %v1795_v7, %v1269_v51  ;;  %2037 = vmatprep.mubr.msk.f32.mxu0 %vm718_vm1, %v1290_v2 }
 0x345   : > { %2038 = vmatmul.mubr.msk.f32.gmra.mrb[28].mxu0 %vm718_vm1, %v1291_v62  ;;  %v1293_v55 = vmax.f32 %v1275_v12, 0.0 }
 0x346   : > { %v1292_v54 = vmax.f32 %v1270_v53, 0.0 }
 0x348   : > { %2040 = vmatprep.mubr.msk.f32.mxu1 %vm718_vm1, %v1292_v54 }
 0x349   : > { %2041 = vmatmul.mubr.msk.f32.vlgmr.msra.gmra.mrb[32].mxu1 %vm718_vm1, %v1293_v55 }
 0x400   : > { %v2021_v8 = vpop.f32.mrb[16].mxu0 }
 0x401   : > { %v1425_v25 = vadd.f32 %v2021_v8, %v1813_v57  ;;  %v1419_v58 = vpop.f32.mrb[17].mxu0 }
 0x402   : > { %v1420_v18 = vadd.f32 %v1813_v57, %v1419_v58 }
 0x403   : > { %1499 = vst.msk [vmem:[%s2601_s15 + $0x8] sm:$0xff] %vm497_vm0, %v1425_v25 }
 0x404   : > { %1498 = vst.msk [vmem:[%s2601_s15] sm:$0xff] %vm497_vm0, %v1420_v18  ;;  %v2024_v59 = vpop.f32.mrb[18].mxu0 }
 0x405   : > { %v1435_v60 = vadd.f32 %v2024_v59, %v1813_v57  ;;  %v1429_v61 = vpop.f32.mrb[19].mxu0 }
 0x406   : > { %v1430_v63 = vadd.f32 %v1813_v57, %v1429_v61 }
 0x407   : > { %1501 = vst.msk [vmem:[%s2601_s15 + $0x18] sm:$0xff] %vm497_vm0, %v1435_v60 }
 0x408   : > { %1500 = vst.msk [vmem:[%s2601_s15 + $0x10] sm:$0xff] %vm497_vm0, %v1430_v63  ;;  %v2027_v0 = vpop.f32.mrb[20].mxu0 }
 0x409   : > { %v1445_v1 = vadd.f32 %v2027_v0, %v1813_v57  ;;  %v1439_v3 = vpop.f32.mrb[21].mxu0 }
 0x40a   : > { %v1440_v4 = vadd.f32 %v1813_v57, %v1439_v3 }
 0x40b   : > { %1503 = vst.msk [vmem:[%s2601_s15 + $0x28] sm:$0xff] %vm497_vm0, %v1445_v1 }
 0x40c   : > { %1502 = vst.msk [vmem:[%s2601_s15 + $0x20] sm:$0xff] %vm497_vm0, %v1440_v4  ;;  %v2030_v5 = vpop.f32.mrb[22].mxu0 }
 0x40d   : > { %v1455_v6 = vadd.f32 %v2030_v5, %v1813_v57  ;;  %v1449_v7 = vpop.f32.mrb[23].mxu0 }
 0x40e   : > { %v1450_v9 = vadd.f32 %v1813_v57, %v1449_v7 }
 0x40f   : > { %1505 = vst.msk [vmem:[%s2601_s15 + $0x38] sm:$0xff] %vm497_vm0, %v1455_v6 }
 0x410   : > { %1504 = vst.msk [vmem:[%s2601_s15 + $0x30] sm:$0xff] %vm497_vm0, %v1450_v9  ;;  %v2033_v24 = vpop.f32.mrb[24].mxu0 }
 0x411   : > { %v1465_v10 = vadd.f32 %v2033_v24, %v1813_v57  ;;  %v1459_v11 = vpop.f32.mrb[25].mxu0 }
 0x412   : > { %v1460_v13 = vadd.f32 %v1813_v57, %v1459_v11 }
 0x413   : > { %1507 = vst.msk [vmem:[%s2601_s15 + $0x48] sm:$0xff] %vm497_vm0, %v1465_v10 }
 0x414   : > { %1506 = vst.msk [vmem:[%s2601_s15 + $0x40] sm:$0xff] %vm497_vm0, %v1460_v13  ;;  %v2036_v31 = vpop.f32.mrb[26].mxu0 }
 0x415   : > { %v1475_v22 = vadd.f32 %v2036_v31, %v1813_v57  ;;  %v1469_v14 = vpop.f32.mrb[27].mxu0 }
 0x416   : > { %v1470_v15 = vadd.f32 %v1813_v57, %v1469_v14 }
 0x417   : > { %1509 = vst.msk [vmem:[%s2601_s15 + $0x58] sm:$0xff] %vm497_vm0, %v1475_v22 }
 0x418   : > { %1508 = vst.msk [vmem:[%s2601_s15 + $0x50] sm:$0xff] %vm497_vm0, %v1470_v15  ;;  %v2039_v16 = vpop.f32.mrb[28].mxu0 }
 0x419   : > { %v1485_v17 = vadd.f32 %v2039_v16, %v1813_v57  ;;  %v1479_v19 = vpop.f32.mrb[29].mxu0 }
 0x41a   : > { %v1480_v28 = vadd.f32 %v1813_v57, %v1479_v19 }
 0x41b   : > { %1511 = vst.msk [vmem:[%s2601_s15 + $0x68] sm:$0xff] %vm497_vm0, %v1485_v17 }
 0x41c   : > { %1510 = vst.msk [vmem:[%s2601_s15 + $0x60] sm:$0xff] %vm497_vm0, %v1480_v28  ;;  %v2042_v21 = vpop.f32.mrb[32].mxu1 }
 0x41d   : > { %v1495_v39 = vadd.f32 %v2042_v21, %v1813_v57  ;;  %v1489_v23 = vpop.f32.mrb[33].mxu1 }
 0x41e   : > { %v1490_v26 = vadd.f32 %v1813_v57, %v1489_v23 }
 0x41f   : > { %1513 = vst.msk [vmem:[%s2601_s15 + $0x78] sm:$0xff] %vm497_vm0, %v1495_v39 }
 0x420   : > { %1512 = vst.msk [vmem:[%s2601_s15 + $0x70] sm:$0xff] %vm497_vm0, %v1490_v26 }
 0x421 PF: > { %s23_s21 = sadd.s32 1, %s2126_s21  }
 0x422   : > { %p20_p4 = scmp.ge.s32.totalorder %s23_s21, 4  }
 0x424   :  { %22 = sbr.rel (!%p20_p4) target bundleno = 1 (0x1), region = 117 }

</bundles_post_ra>
